<compile_context>
chip_gen: v6e
topology: v6e:2x2x1
jax: 0.10.0
libtpu: 0.0.40
codegen_flags: <defaults>
</compile_context>

<pallas_src>
import jax
import jax.numpy as jnp
from jax.experimental import pallas as pl
from jax.experimental.pallas import tpu as pltpu

HIDDEN = 256
# Spec: Actor.action_scale = 1.0 (Python scalar).
# TODO(synk): if per-dimension action_scale / action_bias buffers are needed,
# pass them as extra (1, act_dim) inputs and apply them around tanh instead.
ACTION_SCALE = 1.0


def _round_up(n, m):
    return (n + m - 1) // m * m


def _choose_batch_tile(B, block_b):
    """Batch tile: multiple of 8 sublanes. Tiny batches -> one tile; otherwise
    an even tile count (2k) so the 'parallel' batch axis splits evenly across
    v7x's two TensorCores (irrelevant but harmless on single-TC v5e/v6e)."""
    b8 = _round_up(max(B, 1), 8)
    if b8 <= 8:
        return b8
    k = 1
    while _round_up(pl.cdiv(B, 2 * k), 8) > block_b:
        k += 1
    return _round_up(pl.cdiv(B, 2 * k), 8)


def actor_kernel(x_ref, w1_ref, b1_ref, w2_ref, b2_ref, w3_ref, b3_ref, o_ref):
    # fc1 + ReLU: f32 MXU (tiny K) -> exact parity with the torch f32 layer.
    h1 = jnp.dot(x_ref[...], w1_ref[...], preferred_element_type=jnp.float32)
    h1 = jnp.maximum(h1 + b1_ref[...], 0.0)
    # fc2 + ReLU: bf16 MXU inputs, f32 accumulation; f32 epilogue (VPU).
    h2 = jnp.dot(h1.astype(jnp.bfloat16), w2_ref[...],
                 preferred_element_type=jnp.float32)
    h2 = jnp.maximum(h2 + b2_ref[...], 0.0)
    # fc_mu + tanh * action_scale: bf16 MXU, tanh on EUP, unpadded store.
    mu = jnp.dot(h2.astype(jnp.bfloat16), w3_ref[...],
                 preferred_element_type=jnp.float32)
    o_ref[...] = (jnp.tanh(mu + b3_ref[...]) * ACTION_SCALE).astype(o_ref.dtype)


def prepare_params(params):
    """One-time, cacheable device-side prep of the weights in kernel layout.

    Call this once (outside the per-step forward) and reuse the result: the
    per-call path then only touches x.  fc1 stays f32 (tiny, exact); fc2/fc_mu
    weights are cached as bf16 for the MXU; biases stay f32 (1, out)."""
    def as_bias(b):
        return jnp.asarray(b, jnp.float32).reshape(1, -1)
    return {
        "w1": jnp.asarray(params["w1"], jnp.float32),
        "b1": as_bias(params["b1"]),
        "w2": jnp.asarray(params["w2"], jnp.bfloat16),
        "b2": as_bias(params["b2"]),
        "w3": jnp.asarray(params["w3"], jnp.bfloat16),
        "b3": as_bias(params["b3"]),
    }


def actor_forward(x, prepared, *, block_b=1024):
    """x: (B, obs_dim) f32.  prepared: output of prepare_params().
    Returns (B, act_dim) f32."""
    B, obs_dim = x.shape
    act_dim = prepared["w3"].shape[1]

    tb = _choose_batch_tile(B, block_b)
    b_pad = _round_up(B, tb)

    # Only pad the batch (rows) when needed; x is otherwise passed untouched
    # (no K-padding, no host-side dtype cast).
    if b_pad == B:
        x_p = x
    else:
        x_p = jnp.zeros((b_pad, obs_dim), x.dtype).at[:B].set(x)

    grid = (b_pad // tb,)

    out_padded = pl.pallas_call(
        actor_kernel,
        out_shape=jax.ShapeDtypeStruct((b_pad, act_dim), jnp.float32),
        grid_spec=pltpu.PrefetchScalarGridSpec(
            num_scalar_prefetch=0,
            grid=grid,
            in_specs=[
                # x tile: pipelined over the batch axis, unpadded last dim.
                pl.BlockSpec((tb, obs_dim), lambda i: (i, 0)),
                # Weights/biases: constant index_map -> resident in VMEM
                # across the whole grid (total < 200 KiB).
                # TODO(synk): pipeline_mode=pl.Buffered(1) on these constant
                # operands would drop their redundant second buffer; skipped
                # since the working set is already far below the VMEM limit.
                pl.BlockSpec((obs_dim, HIDDEN), lambda i: (0, 0)),   # w1 (f32)
                pl.BlockSpec((1, HIDDEN), lambda i: (0, 0)),         # b1
                pl.BlockSpec((HIDDEN, HIDDEN), lambda i: (0, 0)),    # w2 (bf16)
                pl.BlockSpec((1, HIDDEN), lambda i: (0, 0)),         # b2
                pl.BlockSpec((HIDDEN, act_dim), lambda i: (0, 0)),   # w3 (bf16)
                pl.BlockSpec((1, act_dim), lambda i: (0, 0)),        # b3
            ],
            # Unpadded output block: full row width -> contiguous HBM writes,
            # ~32x fewer output bytes than an n_pad=128 f32 store for act_dim=4.
            out_specs=pl.BlockSpec((tb, act_dim), lambda i: (i, 0)),
        ),
        compiler_params=pltpu.CompilerParams(
            # Batch tiles are independent -> shard across TensorCores on v7x.
            dimension_semantics=("parallel",),
        ),
    )(x_p, prepared["w1"], prepared["b1"], prepared["w2"], prepared["b2"],
      prepared["w3"], prepared["b3"])

    # TODO(synk): for the per-env-step deployment loop (B~1-8), wall time is
    # dominated by the weight DMA + launch overhead; a cross-call prefetch of
    # the resident weights (P10) would hide it behind the previous step.
    return out_padded if b_pad == B else out_padded[:B]


def init_actor_params(key, obs_dim, act_dim):
    """Deterministic synthetic init (uniform, roughly like torch default Linear init).
    Weights are stored as (in_features, out_features) = torch weight transposed."""
    k1, k2, k3, k4, k5, k6 = jax.random.split(key, 6)

    def lin_init(kw, kb, fan_in, fan_out):
        bound = 1.0 / jnp.sqrt(jnp.float32(fan_in))
        w = jax.random.uniform(kw, (fan_in, fan_out), jnp.float32, -bound, bound)
        b = jax.random.uniform(kb, (1, fan_out), jnp.float32, -bound, bound)
        return w, b

    w1, b1 = lin_init(k1, k2, obs_dim, HIDDEN)
    w2, b2 = lin_init(k3, k4, HIDDEN, HIDDEN)
    w3, b3 = lin_init(k5, k6, HIDDEN, act_dim)
    return {"w1": w1, "b1": b1, "w2": w2, "b2": b2, "w3": w3, "b3": b3}


def actor_forward_ref(x, p):
    """Pure f32 reference (faithful to the PyTorch module)."""
    h1 = jnp.maximum(x @ p["w1"] + p["b1"], 0.0)
    h2 = jnp.maximum(h1 @ p["w2"] + p["b2"], 0.0)
    return jnp.tanh(h2 @ p["w3"] + p["b3"]) * ACTION_SCALE


if __name__ == "__main__":
    obs_dim, act_dim = 16, 4
    key = jax.random.PRNGKey(0)
    kx, kx2, kp = jax.random.split(key, 3)
    params = init_actor_params(kp, obs_dim, act_dim)
    prepared = prepare_params(params)   # one-time weight prep, reused below

    # Small deployment-like shape (single batch tile).
    x_small = jax.random.normal(kx, (2, obs_dim), jnp.float32)
    out_small = jax.block_until_ready(actor_forward(x_small, prepared))
    ref_small = actor_forward_ref(x_small, params)
    assert out_small.shape == (2, act_dim)
    assert jnp.allclose(out_small, ref_small, atol=2e-2, rtol=2e-2), \
        "mismatch vs reference (small batch)"

    # Larger, non-multiple batch: exercises even-count batch tiling + row padding.
    x_big = jax.random.normal(kx2, (300, obs_dim), jnp.float32)
    out_big = jax.block_until_ready(actor_forward(x_big, prepared, block_b=128))
    ref_big = actor_forward_ref(x_big, params)
    assert out_big.shape == (300, act_dim)
    assert jnp.allclose(out_big, ref_big, atol=2e-2, rtol=2e-2), \
        "mismatch vs reference (tiled batch)"

    print("KERNEL_OK")
</pallas_src>

<mosaic_0001>
module attributes {stable_mosaic.version = 11 : i64} {
  func.func @actor_kernel(%arg0: i32, %arg1: memref<8x16xf32, #tpu.memory_space<vmem>>, %arg2: memref<16x256xf32, #tpu.memory_space<vmem>>, %arg3: memref<1x256xf32, #tpu.memory_space<vmem>>, %arg4: memref<256x256xbf16, #tpu.memory_space<vmem>>, %arg5: memref<1x256xf32, #tpu.memory_space<vmem>>, %arg6: memref<256x4xbf16, #tpu.memory_space<vmem>>, %arg7: memref<1x4xf32, #tpu.memory_space<vmem>>, %arg8: memref<8x4xf32, #tpu.memory_space<vmem>>) attributes {dimension_semantics = [#tpu.dimension_semantics<parallel>], iteration_bounds = array<i64: 1>, scalar_prefetch = 0 : i64, scratch_operands = 0 : i64, tpu.core_type = #tpu.core_type<tc>, window_params = [{transform_indices = @transform_0, window_bounds = array<i64: 8, 16>}, {pipeline_mode = #tpu.pipeline_mode<synchronous>, transform_indices = @transform_1, window_bounds = array<i64: 16, 256>}, {pipeline_mode = #tpu.pipeline_mode<synchronous>, transform_indices = @transform_2, window_bounds = array<i64: 1, 256>}, {pipeline_mode = #tpu.pipeline_mode<synchronous>, transform_indices = @transform_3, window_bounds = array<i64: 256, 256>}, {pipeline_mode = #tpu.pipeline_mode<synchronous>, transform_indices = @transform_4, window_bounds = array<i64: 1, 256>}, {pipeline_mode = #tpu.pipeline_mode<synchronous>, transform_indices = @transform_5, window_bounds = array<i64: 256, 4>}, {pipeline_mode = #tpu.pipeline_mode<synchronous>, transform_indices = @transform_6, window_bounds = array<i64: 1, 4>}, {transform_indices = @transform_7, window_bounds = array<i64: 8, 4>}]} {
    %c0 = arith.constant 0 : index
    %c0_0 = arith.constant 0 : index
    %0 = vector.load %arg1[%c0, %c0_0] : memref<8x16xf32, #tpu.memory_space<vmem>>, vector<8x16xf32>
    %c0_1 = arith.constant 0 : index
    %c0_2 = arith.constant 0 : index
    %1 = vector.load %arg2[%c0_1, %c0_2] : memref<16x256xf32, #tpu.memory_space<vmem>>, vector<16x256xf32>
    %cst = arith.constant dense<0.000000e+00> : vector<8x256xf32>
    %2 = tpu.matmul %0, %1, %cst {dimension_numbers = #tpu.dot_dimension_numbers<[1], [0], [0], [1], [0, 0, 1, 1], [], []>} : vector<8x16xf32>, vector<16x256xf32>, vector<8x256xf32> -> vector<8x256xf32>
    %c0_3 = arith.constant 0 : index
    %c0_4 = arith.constant 0 : index
    %3 = vector.load %arg3[%c0_3, %c0_4] : memref<1x256xf32, #tpu.memory_space<vmem>>, vector<1x256xf32>
    %4 = vector.broadcast %3 : vector<1x256xf32> to vector<8x256xf32>
    %5 = arith.addf %2, %4 : vector<8x256xf32>
    %cst_5 = arith.constant 0.000000e+00 : f32
    %6 = vector.broadcast %cst_5 : f32 to vector<8x256xf32>
    %7 = arith.maximumf %5, %6 : vector<8x256xf32>
    %8 = arith.truncf %7 : vector<8x256xf32> to vector<8x256xbf16>
    %c0_6 = arith.constant 0 : index
    %c0_7 = arith.constant 0 : index
    %9 = vector.load %arg4[%c0_6, %c0_7] : memref<256x256xbf16, #tpu.memory_space<vmem>>, vector<256x256xbf16>
    %cst_8 = arith.constant dense<0.000000e+00> : vector<8x256xf32>
    %10 = tpu.matmul %8, %9, %cst_8 {dimension_numbers = #tpu.dot_dimension_numbers<[1], [0], [0], [1], [0, 0, 1, 1], [], []>} : vector<8x256xbf16>, vector<256x256xbf16>, vector<8x256xf32> -> vector<8x256xf32>
    %c0_9 = arith.constant 0 : index
    %c0_10 = arith.constant 0 : index
    %11 = vector.load %arg5[%c0_9, %c0_10] : memref<1x256xf32, #tpu.memory_space<vmem>>, vector<1x256xf32>
    %12 = vector.broadcast %11 : vector<1x256xf32> to vector<8x256xf32>
    %13 = arith.addf %10, %12 : vector<8x256xf32>
    %cst_11 = arith.constant 0.000000e+00 : f32
    %14 = vector.broadcast %cst_11 : f32 to vector<8x256xf32>
    %15 = arith.maximumf %13, %14 : vector<8x256xf32>
    %16 = arith.truncf %15 : vector<8x256xf32> to vector<8x256xbf16>
    %c0_12 = arith.constant 0 : index
    %c0_13 = arith.constant 0 : index
    %17 = vector.load %arg6[%c0_12, %c0_13] : memref<256x4xbf16, #tpu.memory_space<vmem>>, vector<256x4xbf16>
    %cst_14 = arith.constant dense<0.000000e+00> : vector<8x4xf32>
    %18 = tpu.matmul %16, %17, %cst_14 {dimension_numbers = #tpu.dot_dimension_numbers<[1], [0], [0], [1], [0, 0, 1, 1], [], []>} : vector<8x256xbf16>, vector<256x4xbf16>, vector<8x4xf32> -> vector<8x4xf32>
    %c0_15 = arith.constant 0 : index
    %c0_16 = arith.constant 0 : index
    %19 = vector.load %arg7[%c0_15, %c0_16] : memref<1x4xf32, #tpu.memory_space<vmem>>, vector<1x4xf32>
    %20 = vector.broadcast %19 : vector<1x4xf32> to vector<8x4xf32>
    %21 = arith.addf %18, %20 : vector<8x4xf32>
    %22 = math.tanh %21 : vector<8x4xf32>
    %cst_17 = arith.constant 1.000000e+00 : f32
    %23 = vector.broadcast %cst_17 : f32 to vector<8x4xf32>
    %24 = arith.mulf %22, %23 : vector<8x4xf32>
    %c0_18 = arith.constant 0 : index
    %c0_19 = arith.constant 0 : index
    %25 = vector.load %arg8[%c0_18, %c0_19] : memref<8x4xf32, #tpu.memory_space<vmem>>, vector<8x4xf32>
    tpu.vector_store %arg8[%c0_18, %c0_19], %24 {strides = array<i32>} : memref<8x4xf32, #tpu.memory_space<vmem>>, vector<8x4xf32>,
    return
  }
  func.func @transform_0(%arg0: i32) -> (i32, i32) {
    %c0_i32 = arith.constant 0 : i32
    %c0_i32_0 = arith.constant 0 : i32
    return %arg0, %c0_i32 : i32, i32
  }
  func.func @transform_1(%arg0: i32) -> (i32, i32) {
    %c0_i32 = arith.constant 0 : i32
    %c0_i32_0 = arith.constant 0 : i32
    %c0_i32_1 = arith.constant 0 : i32
    return %c0_i32, %c0_i32_0 : i32, i32
  }
  func.func @transform_2(%arg0: i32) -> (i32, i32) {
    %c0_i32 = arith.constant 0 : i32
    %c0_i32_0 = arith.constant 0 : i32
    %c0_i32_1 = arith.constant 0 : i32
    return %c0_i32, %c0_i32_0 : i32, i32
  }
  func.func @transform_3(%arg0: i32) -> (i32, i32) {
    %c0_i32 = arith.constant 0 : i32
    %c0_i32_0 = arith.constant 0 : i32
    %c0_i32_1 = arith.constant 0 : i32
    return %c0_i32, %c0_i32_0 : i32, i32
  }
  func.func @transform_4(%arg0: i32) -> (i32, i32) {
    %c0_i32 = arith.constant 0 : i32
    %c0_i32_0 = arith.constant 0 : i32
    %c0_i32_1 = arith.constant 0 : i32
    return %c0_i32, %c0_i32_0 : i32, i32
  }
  func.func @transform_5(%arg0: i32) -> (i32, i32) {
    %c0_i32 = arith.constant 0 : i32
    %c0_i32_0 = arith.constant 0 : i32
    %c0_i32_1 = arith.constant 0 : i32
    return %c0_i32, %c0_i32_0 : i32, i32
  }
  func.func @transform_6(%arg0: i32) -> (i32, i32) {
    %c0_i32 = arith.constant 0 : i32
    %c0_i32_0 = arith.constant 0 : i32
    %c0_i32_1 = arith.constant 0 : i32
    return %c0_i32, %c0_i32_0 : i32, i32
  }
  func.func @transform_7(%arg0: i32) -> (i32, i32) {
    %c0_i32 = arith.constant 0 : i32
    %c0_i32_0 = arith.constant 0 : i32
    return %arg0, %c0_i32 : i32, i32
  }
}

</mosaic_0001>

<bundles_post_ra>
// kernel: tpu_custom_call.1
= control target key start
LH: loop header
LB: loop body
LE: loop exit
PB: predicated region body
PF: predicated region fallthrough
CT: control target
= control target key end

     0   :  { %12 = vsyncpa [#allocation3], 0  ;;  %s733_s24 = smov [#allocation2]   ;;  %s855_s0 = inlined_call_operand.vmem [shape: f32[8,16], index: 0, kind: input, shape index: {}]   ;;  %s856_s1 = inlined_call_operand.vmem [shape: f32[16,256], index: 1, kind: input, shape index: {}]   ;;  %s857_s2 = inlined_call_operand.vmem [shape: f32[1,256], index: 2, kind: input, shape index: {}]   ;;  %s858_s3 = inlined_call_operand.hbm [shape: bf16[256,256], index: 3, kind: input, shape index: {}]   ;;  %s859_s4 = inlined_call_operand.vmem [shape: f32[1,256], index: 4, kind: input, shape index: {}]   ;;  %s860_s5 = inlined_call_operand.vmem [shape: bf16[256,4], index: 5, kind: input, shape index: {}]   ;;  %s861_s6 = inlined_call_operand.vmem [shape: f32[1,4], index: 6, kind: input, shape index: {}]   ;;  %s862_s7 = inlined_call_operand.vmem [shape: f32[8,4], index: 7, kind: output, shape index: {}]  }
   0x1   :  { %s24_s25 = sshll.u32 %s733_s24, 4  ;;  %s25_s25 = int_to_ptr.vmem [resolvable:$true] %s24_s25 }
   0x2   :  { %s719_s26 = scalar_lea.vmem %s25_s25, 4096  ;;  %p724_p1 = scmp.lt.s32.totalorder %s25_s25, %s25_s25 }
   0x3   :  { %p720_p0 = scmp.ne.s32.totalorder %s25_s25, %s719_s26  ;;  %p725_p2 = scmp.lt.s32.totalorder %s719_s26, %s719_s26 }
   0x5   :  { %p726_p3 = por %p725_p2, %p724_p1 }
   0x7   :  { %p727_p4 = pnand %p726_p3, %p720_p0 }
   0x9   :  { %730 = shalt.err (!%p727_p4)
}
   0xa   :  { %s734_s27 = smov 128   ;;  %s735_s28 = smov 8  }
   0xb   :  { %30 = dma.hbm_to_vmem [thread:$0]  %s858_s3, 4096, %s25_s25, [#allocation3], %s734_s27, %s734_s27, %s735_s28  }
   0xc   :  { %731 = dma.done.wait [#allocation3], 4096  }
   0xd   :  { %732 = vsyncadd [#allocation3], 4294963200  ;;  %v736_v0 = vmov 0.0   ;;  %v45_v1 = vld [vmem:[%s856_s1 + $0x18] sm:$0xff]  ;;  %v44_v2 = vld [vmem:[%s856_s1 + $0x10] sm:$0xff]  ;;  %vm58_vm0 = vcmask 130048   ;;  %v48_v50 = vlaneseq }
   0xe   :  { %126 = vmatprep.mubr.f32.mxu0 %v736_v0  ;;  %v43_v3 = vld [vmem:[%s856_s1 + $0x8] sm:$0xff]  ;;  %90 = vmatprep.subr.mxu0 %v45_v1  ;;  %v42_v4 = vld [vmem:[%s856_s1] sm:$0xff]  ;;  %v645_v6 = vld [vmem:[#allocation2 + $0x74] ss:$8 sps:$4 sm:$0xff]   ;;  %vm562_vm1 = vcmask 31744  }
   0xf   :  { %v41_v5 = vld [vmem:[%s855_s0] sm:$0xff]  ;;  %91 = vmatpush1.msra.mxu0 %v44_v2  ;;  %v647_v7 = vld [vmem:[#allocation2 + $0x70] ss:$8 sps:$4 sm:$0xff]   ;;  %341 = vmatprep.subr.bf16.mxu1 %v645_v6  ;;  %v651_v10 = vld [vmem:[#allocation2 + $0x54] ss:$8 sps:$4 sm:$0xff]   ;;  %v49_v51 = vshrl.u32 %v48_v50, 7 }
  0x10   :  { %92 = vmatprep.subr.mxu0 %v43_v3  ;;  %v648_v8 = vld [vmem:[#allocation2 + $0x64] ss:$8 sps:$4 sm:$0xff]   ;;  %342 = vmatpush1.bf16.msra.mxu1 %v647_v7  ;;  %v650_v9 = vld [vmem:[#allocation2 + $0x60] ss:$8 sps:$4 sm:$0xff]   ;;  %v653_v11 = vld [vmem:[#allocation2 + $0x50] ss:$8 sps:$4 sm:$0xff]  }
  0x11   :  { %93 = vmatpush1.msra.mxu0 %v42_v4  ;;  %343 = vmatprep.subr.bf16.mxu1 %v648_v8  ;;  %v654_v12 = vld [vmem:[#allocation2 + $0x44] ss:$8 sps:$4 sm:$0xff]   ;;  %v656_v13 = vld [vmem:[#allocation2 + $0x40] ss:$8 sps:$4 sm:$0xff]   ;;  %v657_v14 = vld [vmem:[#allocation2 + $0x34] ss:$8 sps:$4 sm:$0xff]  }
  0x12   :  { %569 = vmatmul.mubr.msk.f32.vlgmr.msra.gmra.mxu0 %vm58_vm0, %v41_v5  ;;  %v659_v15 = vld [vmem:[#allocation2 + $0x30] ss:$8 sps:$4 sm:$0xff]   ;;  %v660_v16 = vld [vmem:[#allocation2 + $0x24] ss:$8 sps:$4 sm:$0xff]   ;;  %v662_v17 = vld [vmem:[#allocation2 + $0x20] ss:$8 sps:$4 sm:$0xff]  }
  0x13   :  { %v663_v18 = vld [vmem:[#allocation2 + $0x14] ss:$8 sps:$4 sm:$0xff]   ;;  %v665_v19 = vld [vmem:[#allocation2 + $0x10] ss:$8 sps:$4 sm:$0xff]   ;;  %v666_v20 = vld [vmem:[#allocation2 + $0x4] ss:$8 sps:$4 sm:$0xff]  }
  0x14   :  { %344 = vmatpush1.bf16.msra.mxu1 %v650_v9  ;;  %v668_v21 = vld [vmem:[#allocation2] ss:$8 sps:$4 sm:$0xff]   ;;  %v669_v22 = vld [vmem:[#allocation2 + $0xf4] ss:$8 sps:$4 sm:$0xff]   ;;  %v671_v23 = vld [vmem:[#allocation2 + $0xf0] ss:$8 sps:$4 sm:$0xff]  }
  0x15   :  { %345 = vmatprep.subr.bf16.mxu1 %v651_v10  ;;  %v672_v24 = vld [vmem:[#allocation2 + $0xe4] ss:$8 sps:$4 sm:$0xff]   ;;  %v674_v25 = vld [vmem:[#allocation2 + $0xe0] ss:$8 sps:$4 sm:$0xff]   ;;  %v675_v26 = vld [vmem:[#allocation2 + $0xd4] ss:$8 sps:$4 sm:$0xff]  }
  0x16   :  { %v677_v27 = vld [vmem:[#allocation2 + $0xd0] ss:$8 sps:$4 sm:$0xff]   ;;  %v678_v28 = vld [vmem:[#allocation2 + $0xc4] ss:$8 sps:$4 sm:$0xff]   ;;  %v680_v29 = vld [vmem:[#allocation2 + $0xc0] ss:$8 sps:$4 sm:$0xff]  }
  0x17   :  { %v681_v30 = vld [vmem:[#allocation2 + $0xb4] ss:$8 sps:$4 sm:$0xff]   ;;  %v683_v31 = vld [vmem:[#allocation2 + $0xb0] ss:$8 sps:$4 sm:$0xff]   ;;  %v684_v32 = vld [vmem:[#allocation2 + $0xa4] ss:$8 sps:$4 sm:$0xff]  }
  0x18   :  { %346 = vmatpush1.bf16.msra.mxu1 %v653_v11  ;;  %v686_v33 = vld [vmem:[#allocation2 + $0xa0] ss:$8 sps:$4 sm:$0xff]   ;;  %v687_v34 = vld [vmem:[#allocation2 + $0x94] ss:$8 sps:$4 sm:$0xff]   ;;  %v689_v35 = vld [vmem:[#allocation2 + $0x90] ss:$8 sps:$4 sm:$0xff]  }
  0x19   :  { %347 = vmatprep.subr.bf16.mxu1 %v654_v12  ;;  %v690_v36 = vld [vmem:[#allocation2 + $0x84] ss:$8 sps:$4 sm:$0xff]   ;;  %v692_v37 = vld [vmem:[#allocation2 + $0x80] ss:$8 sps:$4 sm:$0xff]   ;;  %v693_v38 = vld [vmem:[%s860_s5 + $0x78] sm:$0xff]   ;;  %v50_v52 = vsub.s32 0, %v49_v51 }
  0x1a   :  { %v694_v39 = vld [vmem:[%s860_s5 + $0x38] sm:$0xff]   ;;  %v695_v40 = vld [vmem:[%s860_s5 + $0x70] sm:$0xff]   ;;  %619 = vmatprep.subr.bf16.mxu0 %v693_v38  ;;  %v697_v42 = vld [vmem:[%s860_s5 + $0x68] sm:$0xff]   ;;  %v54_v54 = vsub.s32 1, %v49_v51 }
  0x1b   :  { %620 = vmatpush3.bf16.msra.mxu0 %v694_v39  ;;  %v696_v41 = vld [vmem:[%s860_s5 + $0x30] sm:$0xff]   ;;  %v698_v43 = vld [vmem:[%s860_s5 + $0x28] sm:$0xff]   ;;  %v699_v44 = vld [vmem:[%s860_s5 + $0x60] sm:$0xff]  }
  0x1c   :  { %348 = vmatpush1.bf16.msra.mxu1 %v656_v13  ;;  %621 = vmatprep.subr.bf16.mxu0 %v695_v40  ;;  %v700_v45 = vld [vmem:[%s860_s5 + $0x20] sm:$0xff]   ;;  %v701_v46 = vld [vmem:[%s860_s5 + $0x58] sm:$0xff]   ;;  %v703_v48 = vld [vmem:[%s860_s5 + $0x50] sm:$0xff]  }
  0x1d   :  { %349 = vmatprep.subr.bf16.mxu1 %v657_v14  ;;  %v702_v47 = vld [vmem:[%s860_s5 + $0x18] sm:$0xff]   ;;  %v704_v49 = vld [vmem:[%s860_s5 + $0x10] sm:$0xff]   ;;  %v46_v53 = vld [vmem:[%s857_s2] sm:$0x3] }
  0x1e   :  { %v51_v55 = vrot.slane %v46_v53, %v50_v52  ;;  %v55_v56 = vrot.slane %v46_v53, %v54_v54  ;;  %v705_v1 = vld [vmem:[%s860_s5 + $0x48] sm:$0xff]   ;;  %v707_v3 = vld [vmem:[%s860_s5 + $0x40] sm:$0xff]  }
  0x1f   :  { %622 = vmatpush3.bf16.msra.mxu0 %v696_v41  ;;  %v706_v2 = vld [vmem:[%s860_s5 + $0x8] sm:$0xff]   ;;  %v708_v4 = vld [vmem:[%s860_s5] sm:$0xff]  }
  0x20   :  { %350 = vmatpush1.bf16.msra.mxu1 %v659_v15  ;;  %623 = vmatprep.subr.bf16.mxu0 %v697_v42  ;;  %v169_v5 = vld [vmem:[%s859_s4] sm:$0x3] }
  0x21   :  { %351 = vmatprep.subr.bf16.mxu1 %v660_v16  ;;  %v174_v6 = vrot.slane %v169_v5, %v50_v52  ;;  %v178_v7 = vrot.slane %v169_v5, %v54_v54 }
  0x23   :  { %624 = vmatpush3.bf16.msra.mxu0 %v698_v43 }
  0x24   :  { %352 = vmatpush1.bf16.msra.mxu1 %v662_v17  ;;  %625 = vmatprep.subr.bf16.mxu0 %v699_v44 }
  0x25   :  { %353 = vmatprep.subr.bf16.mxu1 %v663_v18 }
  0x27   :  { %626 = vmatpush3.bf16.msra.mxu0 %v700_v45 }
  0x28   :  { %354 = vmatpush1.bf16.msra.mxu1 %v665_v19  ;;  %627 = vmatprep.subr.bf16.mxu0 %v701_v46  ;;  %v602_v19 = vld [vmem:[%s861_s6] ss:$0 sm:$0xff] }
  0x29   :  { %355 = vmatprep.subr.bf16.mxu1 %v666_v20 }
  0x2b   :  { %628 = vmatpush3.bf16.msra.mxu0 %v702_v47 }
  0x2c   :  { %356 = vmatpush1.bf16.msra.mxu1 %v668_v21  ;;  %629 = vmatprep.subr.bf16.mxu0 %v703_v48 }
  0x2d   :  { %357 = vmatprep.subr.bf16.mxu1 %v669_v22 }
  0x2f   :  { %630 = vmatpush3.bf16.msra.mxu0 %v704_v49 }
  0x30   :  { %358 = vmatpush2.bf16.msra.mxu1 %v671_v23  ;;  %631 = vmatprep.subr.bf16.mxu0 %v705_v1 }
  0x31   :  { %359 = vmatprep.subr.bf16.mxu1 %v672_v24 }
  0x33   :  { %632 = vmatpush3.bf16.msra.mxu0 %v706_v2 }
  0x34   :  { %360 = vmatpush2.bf16.msra.mxu1 %v674_v25  ;;  %633 = vmatprep.subr.bf16.mxu0 %v707_v3 }
  0x35   :  { %361 = vmatprep.subr.bf16.mxu1 %v675_v26 }
  0x37   :  { %634 = vmatpush3.bf16.msra.mxu0 %v708_v4 }
  0x38   :  { %362 = vmatpush2.bf16.msra.mxu1 %v677_v27 }
  0x39   :  { %363 = vmatprep.subr.bf16.mxu1 %v678_v28 }
  0x3c   :  { %364 = vmatpush2.bf16.msra.mxu1 %v680_v29 }
  0x3d   :  { %365 = vmatprep.subr.bf16.mxu1 %v681_v30 }
  0x40   :  { %366 = vmatpush2.bf16.msra.mxu1 %v683_v31 }
  0x41   :  { %367 = vmatprep.subr.bf16.mxu1 %v684_v32 }
  0x44   :  { %368 = vmatpush2.bf16.msra.mxu1 %v686_v33 }
  0x45   :  { %369 = vmatprep.subr.bf16.mxu1 %v687_v34 }
  0x48   :  { %370 = vmatpush2.bf16.msra.mxu1 %v689_v35 }
  0x49   :  { %371 = vmatprep.subr.bf16.mxu1 %v690_v36 }
  0x4c   :  { %372 = vmatpush2.bf16.msra.mxu1 %v692_v37 }
  0xd2   :  { %v128_v57 = vpop.f32.mrf.mxu0 }
  0xd3   :  { %v129_v58 = vadd.f32 %v128_v57, %v51_v55 }
  0xd4   :  { %v130_v59 = vpop.f32.mrf.mxu0 }
  0xd5   :  { %v131_v60 = vadd.f32 %v130_v59, %v55_v56  ;;  %v133_v61 = vmax.f32 %v129_v58, 0.0 }
  0xd7   :  { %v134_v62 = vmax.f32 %v131_v60, 0.0  ;;  %v135_v0 = vpack.c.bf16 %v133_v61, %v133_v61 }
  0xd9   :  { %v136_v63 = vpack.c.bf16 %v134_v62, %v134_v62 }
  0xdb   :  { %373 = vmatprep.mubr.bf16.mxu1 %v136_v63 }
  0xdc   :  { %374 = vmatmul.mubr.bf16.vlgmr.msra.gmra.mxu1 %v135_v0 }
 0x19c   :  { %v375_v8 = vpop.f32.mrf.mxu1 }
 0x19d   :  { %v376_v9 = vadd.f32 %v375_v8, %v174_v6 }
 0x19e   :  { %v377_v10 = vpop.f32.mrf.mxu1 }
 0x19f   :  { %v378_v11 = vadd.f32 %v377_v10, %v178_v7  ;;  %v382_v12 = vmax.f32 %v376_v9, 0.0 }
 0x1a0   :  { %v379_v13 = vpop.f32.mrf.mxu1 }
 0x1a1   :  { %v383_v14 = vmax.f32 %v378_v11, 0.0  ;;  %v384_v17 = vpack.c.bf16 %v382_v12, %v382_v12 }
 0x1a2   :  { %v380_v15 = vpop.f32.mrf.mxu1 }
 0x1a3   :  { %v385_v16 = vpack.c.bf16 %v383_v14, %v383_v14 }
 0x1a5   :  { %553 = vmatprep.mubr.bf16.mxu0 %v385_v16 }
 0x1a6   :  { %554 = vmatmul.mubr.bf16.vlgmr.msra.gmra.mxu0 %v384_v17 }
 0x266   :  { %v635_v18 = vpop.f32.mrf.mxu0 }
 0x268   :  { %v636_v20 = vpop.f32.mrf.mxu0 }
 0x269   :  { %v637_v21 = vadd.f32 %v636_v20, %v635_v18 }
 0x26a   :  { %v638_v22 = vpop.f32.mrf.mxu0 }
 0x26b   :  { %v556_v23 = vadd.f32 %v637_v21, %v602_v19 }
 0x26c   :  { %v639_v24 = vpop.f32.mrf.mxu0 }
 0x26d   :  { %709 = vtanh.f32 %v556_v23 }
 0x27a   :  { %v710_v25 = vpop.eup %709 }
 0x27b   :  { %563 = vst.msk [vmem:[%s862_s7] sm:$0xff] %vm562_vm1, %v710_v25 }
 0x27c   :  { %568 = vsyncpa [#allocation3], 1 }

</bundles_post_ra>
